<compile_context>
chip_gen: v7x
topology: tpu7x:2x2x1
jax: 0.10.0
libtpu: 0.0.40
codegen_flags: <defaults>
</compile_context>

<pallas_src>
import functools

import jax
import jax.numpy as jnp
from jax.experimental import pallas as pl
from jax.experimental.pallas import tpu as pltpu


def _interval_dist_kernel(tri_ref, z_ref, d_ref, w_ref, out_ref, *,
                          rows_valid, ray_tile):
    """Per ray-tile partial sums of (term_0 / 2 + term_1 / 3).

    tri_ref           : (S, S)  antisymmetric ±1 constant (resident).
    z_ref/d_ref/w_ref : (TR, S) z_vals / deltas / weights tile (f32).
    out_ref           : (1, S)  lane-dense partial sums over this tile's rays.
    rows_valid        : None if every row of every tile is in-bounds, else the
                        total number of valid rays R (static).
    """
    z = z_ref[...]
    d = d_ref[...]
    w = w_ref[...]

    mids = z + 0.5 * d                                              # (TR, S)

    # MXU: inner[b, i] = sum_{j<i} w[b,j] - sum_{j>i} w[b,j] = 2*A_i + w_i - W
    inner = jnp.dot(w, tri_ref[...], preferred_element_type=jnp.float32)

    # Sorted-interval distortion identity (mids ascending per ray):
    #   term_0 / 2 = sum w * mids * inner
    #   term_1 / 3 = sum w * (w * d) / 3
    elem = w * (mids * inner + (w * d) * (1.0 / 3.0))               # (TR, S)

    if rows_valid is not None:
        # Mask elem itself (not just w): the OOB part of the ragged last block
        # holds unspecified VMEM contents (could be NaN/Inf).
        rows = pl.program_id(0) * ray_tile + jax.lax.broadcasted_iota(
            jnp.int32, elem.shape, 0)
        elem = jnp.where(rows < rows_valid, elem, 0.0)

    # Reduce the ray (sublane) axis only; keep the sample (lane) axis dense so
    # the store is an unmasked 128-wide vst.
    out_ref[...] = jnp.sum(elem, axis=0, keepdims=True)


def interval_dist_loss(z_vals, deltas, weights, *, loss_weight, num_pixels,
                       ray_tile=1024):
    """Pallas implementation of IntervalDistLoss.forward.

    Returns: loss_weight * (term_0 / 2 + term_1 / 3) / num_pixels
    Assumes mids = z_vals + 0.5*deltas are ascending per ray (NeRF samples).
    """
    z_vals = jnp.asarray(z_vals, jnp.float32)
    deltas = jnp.asarray(deltas, jnp.float32)
    weights = jnp.asarray(weights, jnp.float32)

    R, S = z_vals.shape
    rt = int(min(ray_tile, R))
    if rt < R:
        # Block sublane dim must be a multiple of 8 when it is not the full
        # array extent.
        rt = max(8, (rt // 8) * 8)
    num_tiles = pl.cdiv(R, rt)
    rows_valid = R if (R % rt) else None     # mask only needed for ragged grid

    # Antisymmetric ±1 constant: (w @ M)[b,i] = 2*A_i + w_i - W.
    ones = jnp.ones((S, S), jnp.float32)
    tri = jnp.triu(ones, k=1) - jnp.tril(ones, k=-1)

    kernel = functools.partial(_interval_dist_kernel,
                               rows_valid=rows_valid, ray_tile=rt)

    cost = pl.CostEstimate(
        flops=2 * num_tiles * rt * S * S + 5 * R * S,
        transcendentals=0,
        bytes_accessed=3 * R * S * 4 + num_tiles * S * 4 + S * S * 4,
    )

    partials = pl.pallas_call(
        kernel,
        out_shape=jax.ShapeDtypeStruct((num_tiles, S), jnp.float32),
        grid=(num_tiles,),
        in_specs=[
            pl.BlockSpec((S, S), lambda i: (0, 0)),    # resident ±1 constant
            pl.BlockSpec((rt, S), lambda i: (i, 0)),
            pl.BlockSpec((rt, S), lambda i: (i, 0)),
            pl.BlockSpec((rt, S), lambda i: (i, 0)),
        ],
        out_specs=pl.BlockSpec((1, S), lambda i: (i, 0)),
        compiler_params=pltpu.CompilerParams(
            dimension_semantics=("parallel",),
            vmem_limit_bytes=32 * 1024 * 1024),
        cost_estimate=cost,
    )(tri, z_vals, deltas, weights)

    return loss_weight * jnp.sum(partials) / num_pixels


def _reference(z_vals, deltas, weights, loss_weight, num_pixels):
    """Direct transcription of the PyTorch module (O(S^2) pairwise form)."""
    mids = z_vals + 0.5 * deltas
    coef = weights[:, :, None] * weights[:, None, :]
    term_0 = jnp.sum(coef * jnp.abs(mids[:, :, None] - mids[:, None, :]))
    term_1 = jnp.sum(jnp.einsum('bii->bi', coef) * deltas)
    return loss_weight * (term_0 / 2.0 + term_1 / 3.0) / num_pixels


def _make_inputs(key, R, S):
    k1, k2, k3 = jax.random.split(key, 3)
    deltas = jax.random.uniform(k1, (R, S), jnp.float32, 0.01, 0.1)
    near = jax.random.uniform(k2, (R, 1), jnp.float32, 0.0, 1.0)
    # z_vals = interval start points (exclusive cumsum of deltas), so that
    # mids = z + 0.5*d are strictly ascending, as in real NeRF ray samples.
    z_vals = near + jnp.cumsum(deltas, axis=-1) - deltas
    weights = jax.nn.softmax(
        jax.random.normal(k3, (R, S), jnp.float32), axis=-1)
    return z_vals, deltas, weights


if __name__ == "__main__":
    loss_weight = 0.01

    # Case 1: single tile (rt == R), no masking path.
    R, S = 64, 128
    z, d, w = _make_inputs(jax.random.PRNGKey(0), R, S)
    out = jax.block_until_ready(
        interval_dist_loss(z, d, w, loss_weight=loss_weight, num_pixels=R))
    ref = _reference(z, d, w, loss_weight, R)
    assert jnp.allclose(out, ref, rtol=1e-4, atol=1e-7), (out, ref)

    # Case 2: multiple tiles with a ragged last tile -> in-kernel masking,
    # "parallel" grid axis, no jnp.pad of the inputs.
    R2 = 200
    z2, d2, w2 = _make_inputs(jax.random.PRNGKey(1), R2, S)
    out2 = jax.block_until_ready(
        interval_dist_loss(z2, d2, w2, loss_weight=loss_weight,
                           num_pixels=R2, ray_tile=128))
    ref2 = _reference(z2, d2, w2, loss_weight, R2)
    assert jnp.allclose(out2, ref2, rtol=1e-4, atol=1e-7), (out2, ref2)

    print("KERNEL_OK")
</pallas_src>

<mosaic_0001>
module attributes {stable_mosaic.version = 11 : i64} {
  func.func @_interval_dist_kernel(%arg0: i32, %arg1: memref<128x128xf32, #tpu.memory_space<vmem>>, %arg2: memref<64x128xf32, #tpu.memory_space<vmem>>, %arg3: memref<64x128xf32, #tpu.memory_space<vmem>>, %arg4: memref<64x128xf32, #tpu.memory_space<vmem>>, %arg5: memref<1x128xf32, #tpu.memory_space<vmem>>) attributes {dimension_semantics = [#tpu.dimension_semantics<parallel>], iteration_bounds = array<i64: 1>, scalar_prefetch = 0 : i64, scratch_operands = 0 : i64, tpu.core_type = #tpu.core_type<tc>, window_params = [{pipeline_mode = #tpu.pipeline_mode<synchronous>, transform_indices = @transform_0, window_bounds = array<i64: 128, 128>}, {transform_indices = @transform_1, window_bounds = array<i64: 64, 128>}, {transform_indices = @transform_2, window_bounds = array<i64: 64, 128>}, {transform_indices = @transform_3, window_bounds = array<i64: 64, 128>}, {transform_indices = @transform_4, window_bounds = array<i64: 1, 128>}]} {
    %c0 = arith.constant 0 : index
    %c0_0 = arith.constant 0 : index
    %0 = vector.load %arg2[%c0, %c0_0] : memref<64x128xf32, #tpu.memory_space<vmem>>, vector<64x128xf32>
    %c0_1 = arith.constant 0 : index
    %c0_2 = arith.constant 0 : index
    %1 = vector.load %arg3[%c0_1, %c0_2] : memref<64x128xf32, #tpu.memory_space<vmem>>, vector<64x128xf32>
    %c0_3 = arith.constant 0 : index
    %c0_4 = arith.constant 0 : index
    %2 = vector.load %arg4[%c0_3, %c0_4] : memref<64x128xf32, #tpu.memory_space<vmem>>, vector<64x128xf32>
    %cst = arith.constant 5.000000e-01 : f32
    %3 = vector.broadcast %cst : f32 to vector<64x128xf32>
    %4 = arith.mulf %3, %1 : vector<64x128xf32>
    %5 = arith.addf %0, %4 : vector<64x128xf32>
    %c0_5 = arith.constant 0 : index
    %c0_6 = arith.constant 0 : index
    %6 = vector.load %arg1[%c0_5, %c0_6] : memref<128x128xf32, #tpu.memory_space<vmem>>, vector<128x128xf32>
    %cst_7 = arith.constant dense<0.000000e+00> : vector<64x128xf32>
    %7 = tpu.matmul %2, %6, %cst_7 {dimension_numbers = #tpu.dot_dimension_numbers<[1], [0], [0], [1], [0, 0, 1, 1], [], []>} : vector<64x128xf32>, vector<128x128xf32>, vector<64x128xf32> -> vector<64x128xf32>
    %8 = arith.mulf %5, %7 : vector<64x128xf32>
    %9 = arith.mulf %2, %1 : vector<64x128xf32>
    %cst_8 = arith.constant 0.333333343 : f32
    %10 = vector.broadcast %cst_8 : f32 to vector<64x128xf32>
    %11 = arith.mulf %9, %10 : vector<64x128xf32>
    %12 = arith.addf %8, %11 : vector<64x128xf32>
    %13 = arith.mulf %2, %12 : vector<64x128xf32>
    %cst_9 = arith.constant dense<0.000000e+00> : vector<128xf32>
    %14 = vector.multi_reduction <add>, %13, %cst_9 [0] : vector<64x128xf32> to vector<128xf32>
    %15 = vector.shape_cast %14 : vector<128xf32> to vector<1x128xf32>
    %c0_10 = arith.constant 0 : index
    %c0_11 = arith.constant 0 : index
    %16 = vector.load %arg5[%c0_10, %c0_11] : memref<1x128xf32, #tpu.memory_space<vmem>>, vector<1x128xf32>
    tpu.vector_store %arg5[%c0_10, %c0_11], %15 {strides = array<i32>} : memref<1x128xf32, #tpu.memory_space<vmem>>, vector<1x128xf32>,
    return
  }
  func.func @transform_0(%arg0: i32) -> (i32, i32) {
    %c0_i32 = arith.constant 0 : i32
    %c0_i32_0 = arith.constant 0 : i32
    %c0_i32_1 = arith.constant 0 : i32
    return %c0_i32, %c0_i32_0 : i32, i32
  }
  func.func @transform_1(%arg0: i32) -> (i32, i32) {
    %c0_i32 = arith.constant 0 : i32
    %c0_i32_0 = arith.constant 0 : i32
    return %arg0, %c0_i32 : i32, i32
  }
  func.func @transform_2(%arg0: i32) -> (i32, i32) {
    %c0_i32 = arith.constant 0 : i32
    %c0_i32_0 = arith.constant 0 : i32
    return %arg0, %c0_i32 : i32, i32
  }
  func.func @transform_3(%arg0: i32) -> (i32, i32) {
    %c0_i32 = arith.constant 0 : i32
    %c0_i32_0 = arith.constant 0 : i32
    return %arg0, %c0_i32 : i32, i32
  }
  func.func @transform_4(%arg0: i32) -> (i32, i32) {
    %c0_i32 = arith.constant 0 : i32
    %c0_i32_0 = arith.constant 0 : i32
    return %arg0, %c0_i32 : i32, i32
  }
}

</mosaic_0001>

<bundles_post_ra>
// kernel: tpu_custom_call.1
= control target key start
LH: loop header
LB: loop body
LE: loop exit
PB: predicated region body
PF: predicated region fallthrough
CT: control target
= control target key end

     0   :  { %9 = vsyncpa [#allocation3], 0  ;;  %s704_s0 = inlined_call_operand.hbm [shape: f32[128,128], index: 0, kind: input, shape index: {}]   ;;  %s705_s1 = inlined_call_operand.hbm [shape: f32[64,128], index: 1, kind: input, shape index: {}]   ;;  %s706_s2 = inlined_call_operand.hbm [shape: f32[64,128], index: 2, kind: input, shape index: {}]   ;;  %s707_s3 = inlined_call_operand.hbm [shape: f32[64,128], index: 3, kind: input, shape index: {}]   ;;  %s708_s4 = inlined_call_operand.hbm [shape: f32[1,128], index: 4, kind: output, shape index: {}]  }
   0x1   :  { %10 = vsyncpa [#allocation6], 0 }
   0x2   :  { %11 = vsyncpa [#allocation9], 0 }
   0x3   :  { %12 = vsyncpa [#allocation4], 0  ;;  %s546_s15 = smov [#allocation5]   ;;  %s547_s17 = smov [#allocation2]  }
   0x4   :  { %s30_s16 = sshll.u32 %s546_s15, 4  ;;  %s18_s18 = sshll.u32 %s547_s17, 4  ;;  %s31_s16 = int_to_ptr.vmem [resolvable:$true] %s30_s16  ;;  %s578_s18 = int_to_ptr.vmem [resolvable:$true] %s18_s18 }
   0x5   :  { %s428_s21 = scalar_lea.hbm %s705_s1, 1024 }
   0x6   :  { %p429_p0 = scmp.ne.s32.totalorder %s705_s1, %s428_s21  ;;  %p432_p1 = scmp.lt.u32.totalorder %s428_s21, %s705_s1 }
   0x8   :  { %p434_p2 = pnand %p432_p1, %p429_p0 }
   0xa   :  { %437 = shalt.err (!%p434_p2)
}
   0xb   :  { %s438_s26 = scalar_lea.vmem %s31_s16, 1024  ;;  %p443_p4 = scmp.lt.s32.totalorder %s31_s16, %s31_s16 }
   0xc   :  { %p439_p3 = scmp.ne.s32.totalorder %s31_s16, %s438_s26  ;;  %p444_p5 = scmp.lt.s32.totalorder %s438_s26, %s438_s26 }
   0xe   :  { %p445_p6 = por %p444_p5, %p443_p4 }
  0x10   :  { %p446_p7 = pnand %p445_p6, %p439_p3 }
  0x12   :  { %449 = shalt.err (!%p446_p7)
}
  0x13   :  { %s548_s27 = smov 128   ;;  %s549_s28 = smov 8  }
  0x14   :  { %36 = dma.hbm_to_vmem [thread:$0]  %s705_s1, 1024, %s31_s16, [#allocation6], %s548_s27, %s548_s27, %s549_s28  }
  0x15   :  { %s450_s7 = scalar_lea.hbm %s704_s0, 2048 }
  0x16   :  { %p451_p8 = scmp.ne.s32.totalorder %s704_s0, %s450_s7  ;;  %p454_p9 = scmp.lt.u32.totalorder %s450_s7, %s704_s0 }
  0x18   :  { %p456_p10 = pnand %p454_p9, %p451_p8 }
  0x1a   :  { %459 = shalt.err (!%p456_p10)
}
  0x1b   :  { %s460_s12 = scalar_lea.vmem %s578_s18, 2048  ;;  %p465_p12 = scmp.lt.s32.totalorder %s578_s18, %s578_s18 }
  0x1c   :  { %p461_p11 = scmp.ne.s32.totalorder %s578_s18, %s460_s12  ;;  %p466_p13 = scmp.lt.s32.totalorder %s460_s12, %s460_s12 }
  0x1e   :  { %p467_p0 = por %p466_p13, %p465_p12 }
  0x20   :  { %p468_p1 = pnand %p467_p0, %p461_p11 }
  0x22   :  { %471 = shalt.err (!%p468_p1)
}
  0x23   :  { %24 = dma.hbm_to_vmem [thread:$0]  %s704_s0, 2048, %s578_s18, [#allocation3], %s548_s27, %s548_s27, %s549_s28  }
  0x24   :  { %s550_s14 = smov [#allocation7]   ;;  %s551_s16 = smov [#allocation8]  }
  0x25   :  { %s42_s15 = sshll.u32 %s550_s14, 4  ;;  %s54_s17 = sshll.u32 %s551_s16, 4  ;;  %s43_s15 = int_to_ptr.vmem [resolvable:$true] %s42_s15  ;;  %s615_s17 = int_to_ptr.vmem [resolvable:$true] %s54_s17 }
  0x26   :  { %s472_s21 = scalar_lea.hbm %s706_s2, 1024 }
  0x27   :  { %p473_p2 = scmp.ne.s32.totalorder %s706_s2, %s472_s21  ;;  %p476_p3 = scmp.lt.u32.totalorder %s472_s21, %s706_s2 }
  0x29   :  { %p478_p4 = pnand %p476_p3, %p473_p2 }
  0x2b   :  { %481 = shalt.err (!%p478_p4)
}
  0x2c   :  { %s482_s0 = scalar_lea.vmem %s43_s15, 1024  ;;  %p487_p6 = scmp.lt.s32.totalorder %s43_s15, %s43_s15 }
  0x2d   :  { %p483_p5 = scmp.ne.s32.totalorder %s43_s15, %s482_s0  ;;  %p488_p7 = scmp.lt.s32.totalorder %s482_s0, %s482_s0 }
  0x2f   :  { %p489_p8 = por %p488_p7, %p487_p6 }
  0x31   :  { %p490_p9 = pnand %p489_p8, %p483_p5 }
  0x33   :  { %493 = shalt.err (!%p490_p9)
}
  0x34   :  { %48 = dma.hbm_to_vmem [thread:$0]  %s706_s2, 1024, %s43_s15, [#allocation6], %s548_s27, %s548_s27, %s549_s28  }
  0x35   :  { %s494_s5 = scalar_lea.hbm %s707_s3, 1024 }
  0x36   :  { %p495_p10 = scmp.ne.s32.totalorder %s707_s3, %s494_s5  ;;  %p498_p11 = scmp.lt.u32.totalorder %s494_s5, %s707_s3 }
  0x38   :  { %p500_p12 = pnand %p498_p11, %p495_p10 }
  0x3a   :  { %503 = shalt.err (!%p500_p12)
}
  0x3b   :  { %s504_s10 = scalar_lea.vmem %s615_s17, 1024  ;;  %p509_p0 = scmp.lt.s32.totalorder %s615_s17, %s615_s17 }
  0x3c   :  { %p505_p13 = scmp.ne.s32.totalorder %s615_s17, %s504_s10  ;;  %p510_p1 = scmp.lt.s32.totalorder %s504_s10, %s504_s10 }
  0x3e   :  { %p511_p2 = por %p510_p1, %p509_p0 }
  0x40   :  { %p512_p3 = pnand %p511_p2, %p505_p13 }
  0x42   :  { %515 = shalt.err (!%p512_p3)
}
  0x43   :  { %60 = dma.hbm_to_vmem [thread:$0]  %s707_s3, 1024, %s615_s17, [#allocation9], %s548_s27, %s548_s27, %s549_s28  }
  0x44   :  { %538 = dma.done.wait [#allocation3], 2048  }
  0x45   :  { %539 = vsyncadd [#allocation3], 4294965248 }
  0x46   :  { %540 = dma.done.wait [#allocation6], 2048  }
  0x47   :  { %541 = vsyncadd [#allocation6], 4294965248 }
  0x48   :  { %542 = dma.done.wait [#allocation9], 1024  }
  0x49   :  { %543 = vsyncadd [#allocation9], 4294966272  ;;  %v113_v0 = vld [vmem:[#allocation2] sm:$0xff]  ;;  %v114_v1 = vld [vmem:[#allocation2 + $0x8] sm:$0xff]  ;;  %s552_s3 = smov [#allocation10]  }
  0x4a   :  { %v115_v2 = vld [vmem:[#allocation2 + $0x10] sm:$0xff]  ;;  %v373_v3 = vpack.c.bf16 %v114_v1, %v113_v0  ;;  %v116_v4 = vld [vmem:[#allocation2 + $0x18] sm:$0xff]  ;;  %v117_v6 = vld [vmem:[#allocation2 + $0x20] sm:$0xff]  ;;  %s294_s27 = sshll.u32 %s552_s3, 4  ;;  %s295_s27 = int_to_ptr.vmem [resolvable:$true] %s294_s27 }
  0x4b   :  { %v377_v5 = vpack.c.bf16 %v116_v4, %v115_v2  ;;  %v118_v7 = vld [vmem:[#allocation2 + $0x28] sm:$0xff]  ;;  %v652_v9 = vld [vmem:[#allocation8] sm:$0xff]  ;;  %v119_v10 = vld [vmem:[#allocation2 + $0x30] sm:$0xff]  ;;  %s516_s28 = scalar_lea.vmem %s295_s27, 16  ;;  %s520_s12 = scalar_lea.vmem %s295_s27, 32 }
  0x4c   :  { %374 = vmatprep.subr.bf16.mxu0 %v373_v3  ;;  %405 = vmatprep.subr.bf16.mxu1 %v373_v3  ;;  %v381_v8 = vpack.c.bf16 %v118_v7, %v117_v6  ;;  %v120_v11 = vld [vmem:[#allocation2 + $0x38] sm:$0xff]  ;;  %v655_v12 = vld [vmem:[#allocation8 + $0x20] sm:$0xff]  ;;  %v122_v15 = vld [vmem:[#allocation2 + $0x48] sm:$0xff]  ;;  %p517_p4 = scmp.ne.s32.totalorder %s295_s27, %s516_s28  ;;  %p521_p5 = scmp.lt.s32.totalorder %s295_s27, %s295_s27 }
  0x4d   :  { %376 = vmatpush3.bf16.msra.mxu0 %v373_v3  ;;  %413 = vmatpush3.bf16.msra.mxu1 %v373_v3  ;;  %v385_v13 = vpack.c.bf16 %v120_v11, %v119_v10  ;;  %v121_v14 = vld [vmem:[#allocation2 + $0x40] sm:$0xff]  ;;  %v123_v17 = vld [vmem:[#allocation2 + $0x50] sm:$0xff]  ;;  %v124_v18 = vld [vmem:[#allocation2 + $0x58] sm:$0xff]  ;;  %p522_p6 = scmp.lt.s32.totalorder %s520_s12, %s516_s28 }
  0x4e   :  { %378 = vmatprep.subr.bf16.mxu0 %v377_v5  ;;  %406 = vmatprep.subr.bf16.mxu1 %v377_v5  ;;  %v389_v16 = vpack.c.bf16 %v122_v15, %v121_v14  ;;  %v393_v19 = vpack.c.bf16 %v124_v18, %v123_v17  ;;  %v125_v20 = vld [vmem:[#allocation2 + $0x60] sm:$0xff]  ;;  %v126_v21 = vld [vmem:[#allocation2 + $0x68] sm:$0xff]  ;;  %v127_v23 = vld [vmem:[#allocation2 + $0x70] sm:$0xff] }
  0x4f   :  { %361 = vmatprep.mubr.f32.mxu0 %v652_v9  ;;  %367 = vmatprep.mubr.f32.mxu1 %v655_v12  ;;  %v397_v22 = vpack.c.bf16 %v126_v21, %v125_v20  ;;  %v128_v24 = vld [vmem:[#allocation2 + $0x78] sm:$0xff]  ;;  %v658_v26 = vld [vmem:[#allocation8 + $0x8] sm:$0xff]  ;;  %v662_v28 = vld [vmem:[#allocation8 + $0x10] sm:$0xff]  ;;  %p523_p7 = por %p522_p6, %p521_p5 }
  0x50   :  { %v401_v25 = vpack.c.bf16 %v128_v24, %v127_v23  ;;  %v660_v27 = vld [vmem:[#allocation8 + $0x28] sm:$0xff]  ;;  %v664_v29 = vld [vmem:[#allocation8 + $0x30] sm:$0xff]  ;;  %v669_v30 = vld [vmem:[#allocation8 + $0x18] sm:$0xff] }
  0x51   :  { %380 = vmatpush3.bf16.msra.mxu0 %v377_v5  ;;  %414 = vmatpush3.bf16.msra.mxu1 %v377_v5  ;;  %v672_v31 = vld [vmem:[#allocation8 + $0x38] sm:$0xff]  ;;  %v82_v32 = vld [vmem:[#allocation7 + $0x8] sm:$0xff]  ;;  %v81_v33 = vld [vmem:[#allocation7] sm:$0xff]  ;;  %p524_p8 = pnand %p523_p7, %p517_p4 }
  0x52   :  { %382 = vmatprep.subr.bf16.mxu0 %v381_v8  ;;  %407 = vmatprep.subr.bf16.mxu1 %v381_v8  ;;  %v85_v34 = vld [vmem:[#allocation7 + $0x20] sm:$0xff]  ;;  %v98_v35 = vmul.f32 0.5, %v82_v32  ;;  %v84_v36 = vld [vmem:[#allocation7 + $0x18] sm:$0xff]  ;;  %v74_v37 = vld [vmem:[#allocation5 + $0x8] sm:$0xff]  ;;  %v97_v38 = vmul.f32 0.5, %v81_v33  ;;  %v243_v39 = vmul.f32 %v658_v26, %v82_v32  ;;  %v242_v44 = vmul.f32 %v652_v9, %v81_v33 }
  0x53   :  { %v83_v40 = vld [vmem:[#allocation7 + $0x10] sm:$0xff]  ;;  %v86_v41 = vld [vmem:[#allocation7 + $0x28] sm:$0xff]  ;;  %v73_v42 = vld [vmem:[#allocation5] sm:$0xff]  ;;  %v101_v43 = vmul.f32 0.5, %v85_v34  ;;  %v100_v48 = vmul.f32 0.5, %v84_v36  ;;  %v245_v49 = vmul.f32 %v669_v30, %v84_v36  ;;  %v246_v54 = vmul.f32 %v655_v12, %v85_v34 }
  0x54   :  { %v77_v45 = vld [vmem:[#allocation5 + $0x20] sm:$0xff]  ;;  %v87_v46 = vld [vmem:[#allocation7 + $0x30] sm:$0xff]  ;;  %v106_v47 = vadd.f32 %v98_v35, %v74_v37  ;;  %v105_v50 = vadd.f32 %v97_v38, %v73_v42  ;;  %v76_v51 = vld [vmem:[#allocation5 + $0x18] sm:$0xff]  ;;  %v99_v52 = vmul.f32 0.5, %v83_v40  ;;  %v102_v53 = vmul.f32 0.5, %v86_v41 }
  0x55   :  { %384 = vmatpush3.bf16.msra.mxu0 %v381_v8  ;;  %415 = vmatpush3.bf16.msra.mxu1 %v381_v8  ;;  %v251_v55 = vmul.f32 0.33333334, %v243_v39  ;;  %v75_v56 = vld [vmem:[#allocation5 + $0x10] sm:$0xff]  ;;  %v78_v57 = vld [vmem:[#allocation5 + $0x28] sm:$0xff]  ;;  %v109_v58 = vadd.f32 %v101_v43, %v77_v45  ;;  %v244_v59 = vmul.f32 %v662_v28, %v83_v40  ;;  %v88_v60 = vld [vmem:[#allocation7 + $0x38] sm:$0xff]  ;;  %v103_v0 = vmul.f32 0.5, %v87_v46 }
  0x56   :  { %386 = vmatprep.subr.bf16.mxu0 %v385_v13  ;;  %408 = vmatprep.subr.bf16.mxu1 %v385_v13  ;;  %v250_v62 = vmul.f32 0.33333334, %v242_v44  ;;  %v247_v1 = vmul.f32 %v660_v27, %v86_v41  ;;  %v248_v2 = vmul.f32 %v664_v29, %v87_v46  ;;  %v108_v5 = vadd.f32 %v100_v48, %v76_v51  ;;  %v79_v7 = vld [vmem:[#allocation5 + $0x30] sm:$0xff]  ;;  %v80_v21 = vld [vmem:[#allocation5 + $0x38] sm:$0xff] }
  0x57   :  { %v253_v10 = vmul.f32 0.33333334, %v245_v49  ;;  %v107_v11 = vadd.f32 %v99_v52, %v75_v56  ;;  %v104_v17 = vmul.f32 0.5, %v88_v60  ;;  %v252_v20 = vmul.f32 0.33333334, %v244_v59 }
  0x58   :  { %v111_v23 = vadd.f32 %v103_v0, %v79_v7  ;;  %v249_v34 = vmul.f32 %v672_v31, %v88_v60  ;;  %v255_v37 = vmul.f32 0.33333334, %v247_v1  ;;  %v256_v41 = vmul.f32 0.33333334, %v248_v2 }
  0x59   :  { %388 = vmatpush3.bf16.msra.mxu0 %v385_v13  ;;  %416 = vmatpush3.bf16.msra.mxu1 %v385_v13  ;;  %v110_v13 = vadd.f32 %v102_v53, %v78_v57  ;;  %v112_v40 = vadd.f32 %v104_v17, %v80_v21 }
  0x5a   :  { %390 = vmatprep.subr.bf16.mxu0 %v389_v16  ;;  %409 = vmatprep.subr.bf16.mxu1 %v389_v16  ;;  %v257_v48 = vmul.f32 0.33333334, %v249_v34 }
  0x5d   :  { %392 = vmatpush3.bf16.msra.mxu0 %v389_v16  ;;  %417 = vmatpush3.bf16.msra.mxu1 %v389_v16  ;;  %v254_v16 = vmul.f32 0.33333334, %v246_v54 }
  0x5e   :  { %394 = vmatprep.subr.bf16.mxu0 %v393_v19  ;;  %410 = vmatprep.subr.bf16.mxu1 %v393_v19 }
  0x61   :  { %396 = vmatpush3.bf16.msra.mxu0 %v393_v19  ;;  %418 = vmatpush3.bf16.msra.mxu1 %v393_v19 }
  0x62   :  { %398 = vmatprep.subr.bf16.mxu0 %v397_v22  ;;  %411 = vmatprep.subr.bf16.mxu1 %v397_v22 }
  0x65   :  { %400 = vmatpush3.bf16.msra.mxu0 %v397_v22  ;;  %419 = vmatpush3.bf16.msra.mxu1 %v397_v22 }
  0x66   :  { %402 = vmatprep.subr.bf16.mxu0 %v401_v25  ;;  %412 = vmatprep.subr.bf16.mxu1 %v401_v25 }
  0x69   :  { %404 = vmatpush3.bf16.msra.mxu0 %v401_v25  ;;  %420 = vmatpush3.bf16.msra.mxu1 %v401_v25 }
  0x6c   :  { %362 = vmatmul.mubr.f32.vlgmr.msra.gmra.mrb[0].mxu0 %v658_v26  ;;  %368 = vmatmul.mubr.f32.vlgmr.msra.gmra.mrb[0].mxu1 %v660_v27 }
  0x6d   :  { %364 = vmatprep.mubr.f32.mxu0 %v662_v28  ;;  %370 = vmatprep.mubr.f32.mxu1 %v664_v29 }
  0x70   :  { %365 = vmatmul.mubr.f32.gmra.mrb[2].mxu0 %v669_v30  ;;  %371 = vmatmul.mubr.f32.gmra.mrb[2].mxu1 %v672_v31 }
 0x13f   :  { %v363_v61 = vpop.f32.mrb[0].mxu0  ;;  %v369_v63 = vpop.f32.mrb[0].mxu1 }
 0x140   :  { %v235_v3 = vmul.f32 %v363_v61, %v106_v47  ;;  %v195_v4 = vpop.f32.mrb[1].mxu0  ;;  %v215_v6 = vpop.f32.mrb[1].mxu1  ;;  %v239_v38 = vmul.f32 %v369_v63, %v110_v13 }
 0x141   :  { %v234_v8 = vmul.f32 %v195_v4, %v105_v50  ;;  %v238_v15 = vmul.f32 %v215_v6, %v109_v58 }
 0x142   :  { %v259_v14 = vadd.f32 %v251_v55, %v235_v3 }
 0x143   :  { %v258_v18 = vadd.f32 %v250_v62, %v234_v8  ;;  %v366_v19 = vpop.f32.mrb[2].mxu0  ;;  %v372_v22 = vpop.f32.mrb[2].mxu1  ;;  %v262_v39 = vadd.f32 %v254_v16, %v238_v15 }
 0x144   :  { %v267_v24 = vmul.f32 %v259_v14, %v658_v26  ;;  %v237_v25 = vmul.f32 %v366_v19, %v108_v5  ;;  %v205_v32 = vpop.f32.mrb[3].mxu0  ;;  %v225_v33 = vpop.f32.mrb[3].mxu1  ;;  %v263_v26 = vadd.f32 %v255_v37, %v239_v38  ;;  %v241_v47 = vmul.f32 %v372_v22, %v112_v40 }
 0x145   :  { %v266_v35 = vmul.f32 %v258_v18, %v652_v9  ;;  %v236_v36 = vmul.f32 %v205_v32, %v107_v11  ;;  %v240_v45 = vmul.f32 %v225_v33, %v111_v23  ;;  %v270_v9 = vmul.f32 %v262_v39, %v655_v12 }
 0x146   :  { %v261_v43 = vadd.f32 %v253_v10, %v237_v25  ;;  %v271_v53 = vmul.f32 %v263_v26, %v660_v27  ;;  %v265_v55 = vadd.f32 %v257_v48, %v241_v47 }
 0x147   :  { %v274_v42 = vadd.f32 %v267_v24, %v266_v35  ;;  %v260_v44 = vadd.f32 %v252_v20, %v236_v36  ;;  %v264_v51 = vadd.f32 %v256_v41, %v240_v45 }
 0x148   :  { %v269_v49 = vmul.f32 %v261_v43, %v669_v30  ;;  %v273_v58 = vmul.f32 %v265_v55, %v672_v31 }
 0x149   :  { %v268_v46 = vmul.f32 %v260_v44, %v662_v28  ;;  %v272_v56 = vmul.f32 %v264_v51, %v664_v29 }
 0x14b   :  { %v275_v50 = vadd.f32 %v274_v42, %v268_v46 }
 0x14d   :  { %v276_v52 = vadd.f32 %v275_v50, %v269_v49 }
 0x14f   :  { %v277_v54 = vadd.f32 %v276_v52, %v270_v9 }
 0x151   :  { %v278_v57 = vadd.f32 %v277_v54, %v271_v53 }
 0x153   :  { %v279_v28 = vadd.f32 %v278_v57, %v272_v56 }
 0x155   :  { %v280_v59 = vadd.f32 %v279_v28, %v273_v58 }
 0x157   :  { %v281_v60 = vrot.slane %v280_v59, 4 }
 0x159   :  { %v282_v61 = vadd.f32 %v281_v60, %v280_v59 }
 0x15b   :  { %v283_v62 = vrot.slane %v282_v61, 2 }
 0x15d   :  { %v284_v30 = vadd.f32 %v283_v62, %v282_v61 }
 0x15f   :  { %v285_v12 = vrot.slane %v284_v30, 1 }
 0x161   :  { %v286_v63 = vadd.f32 %v285_v12, %v284_v30 }
 0x163   :  { %287 = vst [vmem:[#allocation10] sm:$0x1] %v286_v63 }
 0x164   :  { %527 = shalt.err (!%p524_p8)
}
 0x165   :  { %s528_s14 = scalar_lea.hbm %s708_s4, 16 }
 0x166   :  { %p529_p9 = scmp.ne.s32.totalorder %s708_s4, %s528_s14  ;;  %p532_p10 = scmp.lt.u32.totalorder %s528_s14, %s708_s4 }
 0x168   :  { %p534_p11 = pnand %p532_p10, %p529_p9 }
 0x16a   :  { %537 = shalt.err (!%p534_p11)
}
 0x16b   :  { %297 = dma.vmem_to_hbm [thread:$0]  %s295_s27, 16, %s708_s4, [#allocation4]  }
 0x16c   :  { %544 = dma.done.wait [#allocation4], 16  }
 0x16d   :  { %545 = vsyncadd [#allocation4], 4294967280 }
 0x16e   :  { %301 = vsyncpa [#allocation3], 1 }
 0x16f   :  { %302 = vsyncpa [#allocation6], 1 }
 0x170   :  { %303 = vsyncpa [#allocation9], 1 }
 0x171   :  { %304 = vsyncpa [#allocation4], 1 }

</bundles_post_ra>
